<compile_context>
chip_gen: v5e
topology: v5e:2x2
jax: 0.10.0
libtpu: 0.0.40
codegen_flags: <defaults>
</compile_context>

<pallas_src>
import functools

import jax
import jax.numpy as jnp
from jax.experimental import pallas as pl
from jax.experimental.pallas import tpu as pltpu


# ---------------------------------------------------------------------------
# Kernels
# ---------------------------------------------------------------------------

def _layernorm_kernel(x_ref, w_ref, b_ref, o_ref, *, eps):
    """Plain path: one logical row per slab row (width == hidden)."""
    x = x_ref[...].astype(jnp.float32)                     # (row_tile, hidden)
    inv_h = jnp.float32(1.0 / x.shape[-1])
    s1 = jnp.sum(x, axis=-1, keepdims=True)
    s2 = jnp.sum(x * x, axis=-1, keepdims=True)
    mean = s1 * inv_h
    var = jnp.maximum(s2 * inv_h - mean * mean, 0.0)        # one pass, clamped
    y = (x - mean) * jax.lax.rsqrt(var + eps)
    w = w_ref[...].astype(jnp.float32)
    b = b_ref[...].astype(jnp.float32)
    o_ref[...] = (w * y + b).astype(o_ref.dtype)


def _layernorm_packed_kernel(x_ref, w_ref, b_ref, o_ref, *, eps, hidden, groups):
    """Lane-dense path for hidden < 128: each slab row packs `groups` logical
    rows as contiguous `hidden`-lane segments of a 128-lane row. Per-segment
    sums are exact masked full-lane reductions (no matmul / int division)."""
    x = x_ref[...].astype(jnp.float32)                      # (row_tile, P=128)
    p = hidden * groups
    lane = jax.lax.broadcasted_iota(jnp.int32, (1, p), 1)
    inv_h = jnp.float32(1.0 / hidden)
    xx = x * x
    mean = jnp.zeros_like(x)
    msq = jnp.zeros_like(x)
    for g in range(groups):                                 # static unroll
        seg = jnp.logical_and(lane >= g * hidden, lane < (g + 1) * hidden)
        mf = seg.astype(jnp.float32)                        # (1, P)
        s1 = jnp.sum(x * mf, axis=-1, keepdims=True)        # (row_tile, 1)
        s2 = jnp.sum(xx * mf, axis=-1, keepdims=True)
        mean = mean + (s1 * inv_h) * mf
        msq = msq + (s2 * inv_h) * mf
    var = jnp.maximum(msq - mean * mean, 0.0)
    y = (x - mean) * jax.lax.rsqrt(var + eps)
    w = w_ref[...].astype(jnp.float32)
    b = b_ref[...].astype(jnp.float32)
    o_ref[...] = (w * y + b).astype(o_ref.dtype)


# ---------------------------------------------------------------------------
# Tiling / VMEM heuristics
# ---------------------------------------------------------------------------

def _vmem_capacity_bytes():
    try:
        return int(pltpu.get_tpu_info().vmem_capacity_bytes)
    except Exception:
        return 64 << 20        # conservative default: v7x per-TensorCore VMEM


def _round_down(v, m):
    return (v // m) * m


def _round_up(v, m):
    return ((v + m - 1) // m) * m


def _pick_row_tile(rows, width, itemsize, vmem_cap):
    """Row tile: big enough to reach HBM roofline, small enough to keep the
    pipeline full (>=8, preferably even, grid steps) and fit VMEM including
    f32 intermediates."""
    align = max(8, 32 // max(1, itemsize))          # sublane packing granule
    # Per-buffer cap (~4 MiB): measured on v6e, ~1-4 MiB tiles already hit
    # ~85% of HBM roofline; bigger tiles only starve the pipeline of steps.
    per_buf_cap = 4 << 20
    max_rows_buf = max(align, _round_down(per_buf_cap // (width * itemsize), align))
    # Total budget ~40% of VMEM capacity, covering 3 input buffers, 2 output
    # buffers (5*itemsize) and ~3 f32 intermediates (12 bytes) per element.
    budget = int(vmem_cap * 0.4)
    per_row_bytes = width * (5 * itemsize + 12)
    max_rows_vmem = max(align, _round_down(budget // per_row_bytes, align))
    max_rows = min(max_rows_buf, max_rows_vmem, 4096)

    if rows <= max_rows:
        # One block covering every row (block dim == full dim is always legal).
        return rows

    # Keep >= 8 grid steps when rows allow: pipeline always has prefetch /
    # writeback work, and v7x's two TensorCores get a balanced split.
    target_steps = 8
    if rows >= target_steps * align:
        max_rows = min(max_rows, max(align, _round_down(rows // target_steps, align)))
    row_tile = max(align, max_rows)

    # Prefer an even step count (v7x 2-TC balance) if a slightly smaller tile
    # achieves it.
    steps = -(-rows // row_tile)
    if steps % 2 == 1 and steps > 1:
        cand = max(align, _round_up(-(-rows // (steps + 1)), align))
        if cand <= row_tile and (-(-rows // cand)) % 2 == 0:
            row_tile = cand
    return row_tile


# ---------------------------------------------------------------------------
# pallas_call runner + public wrapper
# ---------------------------------------------------------------------------

def _run_rows_kernel(kernel, x2, w2, b2):
    rows, width = x2.shape
    itemsize = jnp.dtype(x2.dtype).itemsize
    vmem_cap = _vmem_capacity_bytes()
    row_tile = _pick_row_tile(rows, width, itemsize, vmem_cap)
    steps = -(-rows // row_tile)

    # Triple-buffer the input only when the grid is long enough to benefit
    # (hides per-step DMA latency on v7x's faster HBM); otherwise keep the
    # default double buffering.
    if steps >= 4:
        x_spec = pl.BlockSpec((row_tile, width), lambda i: (i, 0),
                              pipeline_mode=pl.Buffered(3))
        n_in_bufs = 3
    else:
        x_spec = pl.BlockSpec((row_tile, width), lambda i: (i, 0))
        n_in_bufs = 2

    # VMEM sized to the real footprint: in/out buffers + ~3 f32 intermediates
    # of the live tile + weight/bias.
    tile_bytes = row_tile * width * itemsize
    f32_tmp_bytes = 3 * row_tile * width * 4
    wb_bytes = 4 * width * jnp.dtype(w2.dtype).itemsize
    footprint = (n_in_bufs + 2) * tile_bytes + f32_tmp_bytes + wb_bytes
    vmem_limit = max(32 << 20, footprint + (4 << 20))
    vmem_limit = int(min(vmem_limit, int(vmem_cap * 0.9), 110 << 20))

    return pl.pallas_call(
        kernel,
        out_shape=jax.ShapeDtypeStruct((rows, width), x2.dtype),
        grid_spec=pltpu.PrefetchScalarGridSpec(
            num_scalar_prefetch=0,
            grid=(pl.cdiv(rows, row_tile),),
            in_specs=[
                x_spec,
                # Constant block index: Pallas skips re-DMA of weight/bias.
                pl.BlockSpec((1, width), lambda i: (0, 0)),
                pl.BlockSpec((1, width), lambda i: (0, 0)),
            ],
            out_specs=pl.BlockSpec((row_tile, width), lambda i: (i, 0)),
        ),
        compiler_params=pltpu.CompilerParams(
            dimension_semantics=("parallel",),
            vmem_limit_bytes=vmem_limit,
        ),
    )(x2, w2, b2)


def layer_norm(x, weight, bias, eps=1e-12):
    """LayerNorm over the last axis of x (x: (..., hidden))."""
    orig_shape = x.shape
    hidden = orig_shape[-1]
    rows = 1
    for d in orig_shape[:-1]:
        rows *= d
    x2 = x.reshape(rows, hidden)

    # Lane-dense path for narrow hidden: fold 128 // hidden rows into the lane
    # axis so every store is an unmasked, full-lane vst.
    if (hidden < 128 and hidden >= 8 and 128 % hidden == 0
            and rows > 0 and rows % (128 // hidden) == 0):
        groups = 128 // hidden
        p = groups * hidden
        xp = x2.reshape(rows // groups, p)
        wp = jnp.tile(weight.reshape(1, hidden), (1, groups))
        bp = jnp.tile(bias.reshape(1, hidden), (1, groups))
        kernel = functools.partial(_layernorm_packed_kernel, eps=eps,
                                   hidden=hidden, groups=groups)
        out = _run_rows_kernel(kernel, xp, wp, bp)
        return out.reshape(orig_shape)

    # TODO(synk): extremely large hidden (a single `align`-row tile over the
    # VMEM budget) would need a chunked-hidden two-pass accumulation path.
    kernel = functools.partial(_layernorm_kernel, eps=eps)
    out = _run_rows_kernel(kernel, x2, weight.reshape(1, hidden),
                           bias.reshape(1, hidden))
    return out.reshape(orig_shape)


if __name__ == "__main__":
    # Module init: weight = ones(hid_dim), bias = zeros(hid_dim), eps = 1e-12.
    batch, seq, hid_dim = 2, 8, 32
    key = jax.random.PRNGKey(0)
    x = jax.random.normal(key, (batch, seq, hid_dim), dtype=jnp.float32)
    weight = jnp.ones((hid_dim,), dtype=jnp.float32)
    bias = jnp.zeros((hid_dim,), dtype=jnp.float32)

    y = layer_norm(x, weight, bias, eps=1e-12)
    y = jax.block_until_ready(y)

    # Reference check in plain JAX (same math as the PyTorch module).
    u = jnp.mean(x, axis=-1, keepdims=True)
    s = jnp.mean((x - u) ** 2, axis=-1, keepdims=True)
    ref = weight * ((x - u) / jnp.sqrt(s + 1e-12)) + bias
    assert jnp.allclose(y, ref, atol=1e-5, rtol=1e-5), "mismatch vs reference"

    print("KERNEL_OK")
</pallas_src>

<mosaic_0001>
module attributes {stable_mosaic.version = 11 : i64} {
  func.func @_layernorm_packed_kernel(%arg0: i32, %arg1: memref<4x128xf32, #tpu.memory_space<vmem>>, %arg2: memref<1x128xf32, #tpu.memory_space<vmem>>, %arg3: memref<1x128xf32, #tpu.memory_space<vmem>>, %arg4: memref<4x128xf32, #tpu.memory_space<vmem>>) attributes {dimension_semantics = [#tpu.dimension_semantics<parallel>], iteration_bounds = array<i64: 1>, scalar_prefetch = 0 : i64, scratch_operands = 0 : i64, tpu.core_type = #tpu.core_type<tc>, window_params = [{transform_indices = @transform_0, window_bounds = array<i64: 4, 128>}, {pipeline_mode = #tpu.pipeline_mode<synchronous>, transform_indices = @transform_1, window_bounds = array<i64: 1, 128>}, {pipeline_mode = #tpu.pipeline_mode<synchronous>, transform_indices = @transform_2, window_bounds = array<i64: 1, 128>}, {transform_indices = @transform_3, window_bounds = array<i64: 4, 128>}]} {
    %c0 = arith.constant 0 : index
    %c0_0 = arith.constant 0 : index
    %0 = vector.load %arg1[%c0, %c0_0] : memref<4x128xf32, #tpu.memory_space<vmem>>, vector<4x128xf32>
    %1 = tpu.iota {dimensions = array<i32: 1>} : vector<1x128xi32>
    %2 = arith.mulf %0, %0 : vector<4x128xf32>
    %cst = arith.constant 0.000000e+00 : f32
    %3 = vector.broadcast %cst : f32 to vector<4x128xf32>
    %cst_1 = arith.constant 0.000000e+00 : f32
    %4 = vector.broadcast %cst_1 : f32 to vector<4x128xf32>
    %c0_i32 = arith.constant 0 : i32
    %5 = vector.broadcast %c0_i32 : i32 to vector<1x128xi32>
    %6 = arith.cmpi sge, %1, %5 : vector<1x128xi32>
    %c32_i32 = arith.constant 32 : i32
    %7 = vector.broadcast %c32_i32 : i32 to vector<1x128xi32>
    %8 = arith.cmpi slt, %1, %7 : vector<1x128xi32>
    %9 = arith.andi %6, %8 : vector<1x128xi1>
    %10 = arith.extui %9 : vector<1x128xi1> to vector<1x128xi32>
    %11 = arith.sitofp %10 : vector<1x128xi32> to vector<1x128xf32>
    %12 = vector.broadcast %11 : vector<1x128xf32> to vector<4x128xf32>
    %13 = arith.mulf %0, %12 : vector<4x128xf32>
    %cst_2 = arith.constant dense<0.000000e+00> : vector<4xf32>
    %14 = vector.multi_reduction <add>, %13, %cst_2 [1] : vector<4x128xf32> to vector<4xf32>
    %15 = vector.shape_cast %14 : vector<4xf32> to vector<4x1xf32>
    %16 = vector.broadcast %11 : vector<1x128xf32> to vector<4x128xf32>
    %17 = arith.mulf %2, %16 : vector<4x128xf32>
    %cst_3 = arith.constant dense<0.000000e+00> : vector<4xf32>
    %18 = vector.multi_reduction <add>, %17, %cst_3 [1] : vector<4x128xf32> to vector<4xf32>
    %19 = vector.shape_cast %18 : vector<4xf32> to vector<4x1xf32>
    %cst_4 = arith.constant 3.125000e-02 : f32
    %20 = vector.broadcast %cst_4 : f32 to vector<4x1xf32>
    %21 = arith.mulf %15, %20 : vector<4x1xf32>
    %22 = vector.broadcast %21 : vector<4x1xf32> to vector<4x128xf32>
    %23 = vector.broadcast %11 : vector<1x128xf32> to vector<4x128xf32>
    %24 = arith.mulf %22, %23 : vector<4x128xf32>
    %25 = arith.addf %3, %24 : vector<4x128xf32>
    %cst_5 = arith.constant 3.125000e-02 : f32
    %26 = vector.broadcast %cst_5 : f32 to vector<4x1xf32>
    %27 = arith.mulf %19, %26 : vector<4x1xf32>
    %28 = vector.broadcast %27 : vector<4x1xf32> to vector<4x128xf32>
    %29 = vector.broadcast %11 : vector<1x128xf32> to vector<4x128xf32>
    %30 = arith.mulf %28, %29 : vector<4x128xf32>
    %31 = arith.addf %4, %30 : vector<4x128xf32>
    %c32_i32_6 = arith.constant 32 : i32
    %32 = vector.broadcast %c32_i32_6 : i32 to vector<1x128xi32>
    %33 = arith.cmpi sge, %1, %32 : vector<1x128xi32>
    %c64_i32 = arith.constant 64 : i32
    %34 = vector.broadcast %c64_i32 : i32 to vector<1x128xi32>
    %35 = arith.cmpi slt, %1, %34 : vector<1x128xi32>
    %36 = arith.andi %33, %35 : vector<1x128xi1>
    %37 = arith.extui %36 : vector<1x128xi1> to vector<1x128xi32>
    %38 = arith.sitofp %37 : vector<1x128xi32> to vector<1x128xf32>
    %39 = vector.broadcast %38 : vector<1x128xf32> to vector<4x128xf32>
    %40 = arith.mulf %0, %39 : vector<4x128xf32>
    %cst_7 = arith.constant dense<0.000000e+00> : vector<4xf32>
    %41 = vector.multi_reduction <add>, %40, %cst_7 [1] : vector<4x128xf32> to vector<4xf32>
    %42 = vector.shape_cast %41 : vector<4xf32> to vector<4x1xf32>
    %43 = vector.broadcast %38 : vector<1x128xf32> to vector<4x128xf32>
    %44 = arith.mulf %2, %43 : vector<4x128xf32>
    %cst_8 = arith.constant dense<0.000000e+00> : vector<4xf32>
    %45 = vector.multi_reduction <add>, %44, %cst_8 [1] : vector<4x128xf32> to vector<4xf32>
    %46 = vector.shape_cast %45 : vector<4xf32> to vector<4x1xf32>
    %cst_9 = arith.constant 3.125000e-02 : f32
    %47 = vector.broadcast %cst_9 : f32 to vector<4x1xf32>
    %48 = arith.mulf %42, %47 : vector<4x1xf32>
    %49 = vector.broadcast %48 : vector<4x1xf32> to vector<4x128xf32>
    %50 = vector.broadcast %38 : vector<1x128xf32> to vector<4x128xf32>
    %51 = arith.mulf %49, %50 : vector<4x128xf32>
    %52 = arith.addf %25, %51 : vector<4x128xf32>
    %cst_10 = arith.constant 3.125000e-02 : f32
    %53 = vector.broadcast %cst_10 : f32 to vector<4x1xf32>
    %54 = arith.mulf %46, %53 : vector<4x1xf32>
    %55 = vector.broadcast %54 : vector<4x1xf32> to vector<4x128xf32>
    %56 = vector.broadcast %38 : vector<1x128xf32> to vector<4x128xf32>
    %57 = arith.mulf %55, %56 : vector<4x128xf32>
    %58 = arith.addf %31, %57 : vector<4x128xf32>
    %c64_i32_11 = arith.constant 64 : i32
    %59 = vector.broadcast %c64_i32_11 : i32 to vector<1x128xi32>
    %60 = arith.cmpi sge, %1, %59 : vector<1x128xi32>
    %c96_i32 = arith.constant 96 : i32
    %61 = vector.broadcast %c96_i32 : i32 to vector<1x128xi32>
    %62 = arith.cmpi slt, %1, %61 : vector<1x128xi32>
    %63 = arith.andi %60, %62 : vector<1x128xi1>
    %64 = arith.extui %63 : vector<1x128xi1> to vector<1x128xi32>
    %65 = arith.sitofp %64 : vector<1x128xi32> to vector<1x128xf32>
    %66 = vector.broadcast %65 : vector<1x128xf32> to vector<4x128xf32>
    %67 = arith.mulf %0, %66 : vector<4x128xf32>
    %cst_12 = arith.constant dense<0.000000e+00> : vector<4xf32>
    %68 = vector.multi_reduction <add>, %67, %cst_12 [1] : vector<4x128xf32> to vector<4xf32>
    %69 = vector.shape_cast %68 : vector<4xf32> to vector<4x1xf32>
    %70 = vector.broadcast %65 : vector<1x128xf32> to vector<4x128xf32>
    %71 = arith.mulf %2, %70 : vector<4x128xf32>
    %cst_13 = arith.constant dense<0.000000e+00> : vector<4xf32>
    %72 = vector.multi_reduction <add>, %71, %cst_13 [1] : vector<4x128xf32> to vector<4xf32>
    %73 = vector.shape_cast %72 : vector<4xf32> to vector<4x1xf32>
    %cst_14 = arith.constant 3.125000e-02 : f32
    %74 = vector.broadcast %cst_14 : f32 to vector<4x1xf32>
    %75 = arith.mulf %69, %74 : vector<4x1xf32>
    %76 = vector.broadcast %75 : vector<4x1xf32> to vector<4x128xf32>
    %77 = vector.broadcast %65 : vector<1x128xf32> to vector<4x128xf32>
    %78 = arith.mulf %76, %77 : vector<4x128xf32>
    %79 = arith.addf %52, %78 : vector<4x128xf32>
    %cst_15 = arith.constant 3.125000e-02 : f32
    %80 = vector.broadcast %cst_15 : f32 to vector<4x1xf32>
    %81 = arith.mulf %73, %80 : vector<4x1xf32>
    %82 = vector.broadcast %81 : vector<4x1xf32> to vector<4x128xf32>
    %83 = vector.broadcast %65 : vector<1x128xf32> to vector<4x128xf32>
    %84 = arith.mulf %82, %83 : vector<4x128xf32>
    %85 = arith.addf %58, %84 : vector<4x128xf32>
    %c96_i32_16 = arith.constant 96 : i32
    %86 = vector.broadcast %c96_i32_16 : i32 to vector<1x128xi32>
    %87 = arith.cmpi sge, %1, %86 : vector<1x128xi32>
    %c128_i32 = arith.constant 128 : i32
    %88 = vector.broadcast %c128_i32 : i32 to vector<1x128xi32>
    %89 = arith.cmpi slt, %1, %88 : vector<1x128xi32>
    %90 = arith.andi %87, %89 : vector<1x128xi1>
    %91 = arith.extui %90 : vector<1x128xi1> to vector<1x128xi32>
    %92 = arith.sitofp %91 : vector<1x128xi32> to vector<1x128xf32>
    %93 = vector.broadcast %92 : vector<1x128xf32> to vector<4x128xf32>
    %94 = arith.mulf %0, %93 : vector<4x128xf32>
    %cst_17 = arith.constant dense<0.000000e+00> : vector<4xf32>
    %95 = vector.multi_reduction <add>, %94, %cst_17 [1] : vector<4x128xf32> to vector<4xf32>
    %96 = vector.shape_cast %95 : vector<4xf32> to vector<4x1xf32>
    %97 = vector.broadcast %92 : vector<1x128xf32> to vector<4x128xf32>
    %98 = arith.mulf %2, %97 : vector<4x128xf32>
    %cst_18 = arith.constant dense<0.000000e+00> : vector<4xf32>
    %99 = vector.multi_reduction <add>, %98, %cst_18 [1] : vector<4x128xf32> to vector<4xf32>
    %100 = vector.shape_cast %99 : vector<4xf32> to vector<4x1xf32>
    %cst_19 = arith.constant 3.125000e-02 : f32
    %101 = vector.broadcast %cst_19 : f32 to vector<4x1xf32>
    %102 = arith.mulf %96, %101 : vector<4x1xf32>
    %103 = vector.broadcast %102 : vector<4x1xf32> to vector<4x128xf32>
    %104 = vector.broadcast %92 : vector<1x128xf32> to vector<4x128xf32>
    %105 = arith.mulf %103, %104 : vector<4x128xf32>
    %106 = arith.addf %79, %105 : vector<4x128xf32>
    %cst_20 = arith.constant 3.125000e-02 : f32
    %107 = vector.broadcast %cst_20 : f32 to vector<4x1xf32>
    %108 = arith.mulf %100, %107 : vector<4x1xf32>
    %109 = vector.broadcast %108 : vector<4x1xf32> to vector<4x128xf32>
    %110 = vector.broadcast %92 : vector<1x128xf32> to vector<4x128xf32>
    %111 = arith.mulf %109, %110 : vector<4x128xf32>
    %112 = arith.addf %85, %111 : vector<4x128xf32>
    %113 = arith.mulf %106, %106 : vector<4x128xf32>
    %114 = arith.subf %112, %113 : vector<4x128xf32>
    %cst_21 = arith.constant 0.000000e+00 : f32
    %115 = vector.broadcast %cst_21 : f32 to vector<4x128xf32>
    %116 = arith.maximumf %114, %115 : vector<4x128xf32>
    %117 = arith.subf %0, %106 : vector<4x128xf32>
    %cst_22 = arith.constant 9.99999996E-13 : f32
    %118 = vector.broadcast %cst_22 : f32 to vector<4x128xf32>
    %119 = arith.addf %116, %118 : vector<4x128xf32>
    %120 = math.rsqrt %119 : vector<4x128xf32>
    %121 = arith.mulf %117, %120 : vector<4x128xf32>
    %c0_23 = arith.constant 0 : index
    %c0_24 = arith.constant 0 : index
    %122 = vector.load %arg2[%c0_23, %c0_24] : memref<1x128xf32, #tpu.memory_space<vmem>>, vector<1x128xf32>
    %c0_25 = arith.constant 0 : index
    %c0_26 = arith.constant 0 : index
    %123 = vector.load %arg3[%c0_25, %c0_26] : memref<1x128xf32, #tpu.memory_space<vmem>>, vector<1x128xf32>
    %124 = vector.broadcast %122 : vector<1x128xf32> to vector<4x128xf32>
    %125 = arith.mulf %124, %121 : vector<4x128xf32>
    %126 = vector.broadcast %123 : vector<1x128xf32> to vector<4x128xf32>
    %127 = arith.addf %125, %126 : vector<4x128xf32>
    %c0_27 = arith.constant 0 : index
    %c0_28 = arith.constant 0 : index
    %128 = vector.load %arg4[%c0_27, %c0_28] : memref<4x128xf32, #tpu.memory_space<vmem>>, vector<4x128xf32>
    tpu.vector_store %arg4[%c0_27, %c0_28], %127 {strides = array<i32>} : memref<4x128xf32, #tpu.memory_space<vmem>>, vector<4x128xf32>,
    return
  }
  func.func @transform_0(%arg0: i32) -> (i32, i32) {
    %c0_i32 = arith.constant 0 : i32
    %c0_i32_0 = arith.constant 0 : i32
    return %arg0, %c0_i32 : i32, i32
  }
  func.func @transform_1(%arg0: i32) -> (i32, i32) {
    %c0_i32 = arith.constant 0 : i32
    %c0_i32_0 = arith.constant 0 : i32
    %c0_i32_1 = arith.constant 0 : i32
    return %c0_i32, %c0_i32_0 : i32, i32
  }
  func.func @transform_2(%arg0: i32) -> (i32, i32) {
    %c0_i32 = arith.constant 0 : i32
    %c0_i32_0 = arith.constant 0 : i32
    %c0_i32_1 = arith.constant 0 : i32
    return %c0_i32, %c0_i32_0 : i32, i32
  }
  func.func @transform_3(%arg0: i32) -> (i32, i32) {
    %c0_i32 = arith.constant 0 : i32
    %c0_i32_0 = arith.constant 0 : i32
    return %arg0, %c0_i32 : i32, i32
  }
}

</mosaic_0001>

<bundles_post_ra>
// kernel: tpu_custom_call.1
= control target key start
LH: loop header
LB: loop body
LE: loop exit
PB: predicated region body
PF: predicated region fallthrough
CT: control target
= control target key end

     0   :  { %8 = vsyncpa [#allocation3], 0  ;;  %s312_s0 = inlined_call_operand.hbm [shape: f32[4,128], index: 0, kind: input, shape index: {}]   ;;  %s313_s1 = inlined_call_operand.hbm [shape: f32[1,128], index: 1, kind: input, shape index: {}]   ;;  %s314_s2 = inlined_call_operand.vmem [shape: f32[1,128], index: 2, kind: input, shape index: {}]   ;;  %s315_s3 = inlined_call_operand.hbm [shape: f32[4,128], index: 3, kind: output, shape index: {}]  }
   0x1   :  { %9 = vsyncpa [#allocation6], 0 }
   0x2   :  { %10 = vsyncpa [#allocation4], 0  ;;  %s16_s14 = sshll.u32 %s312_s0, 4  ;;  %s259_s15 = smov [#allocation2]   ;;  %s17_s14 = int_to_ptr.hbm [resolvable:$true] %s16_s14 }
   0x3   :  { %s18_s16 = sshll.u32 %s259_s15, 4  ;;  %s27_s19 = sshll.u32 %s313_s1, 4  ;;  %s19_s16 = int_to_ptr.vmem [resolvable:$true] %s18_s16  ;;  %s28_s19 = int_to_ptr.hbm [resolvable:$true] %s27_s19 }
   0x4   :  { %21 = dma.hbm_to_vmem [thread:$0]  %s17_s14, 64, %s19_s16, [#allocation3]  }
   0x5   :  { %s260_s20 = smov [#allocation5]  }
   0x6   :  { %s29_s21 = sshll.u32 %s260_s20, 4  ;;  %s30_s21 = int_to_ptr.vmem [resolvable:$true] %s29_s21 }
   0x7   :  { %32 = dma.hbm_to_vmem [thread:$0]  %s28_s19, 16, %s30_s21, [#allocation6]  }
   0x8   :  { %253 = dma.done.wait [#allocation3], 64  }
   0x9   :  { %254 = vsyncadd [#allocation3], 4294967232 }
   0xa   :  { %255 = dma.done.wait [#allocation6], 16  }
   0xb   :  { %256 = vsyncadd [#allocation6], 4294967280  ;;  %v44_v0 = vlaneseq  ;;  %v261_v2 = vmov 0.0   ;;  %v289_v5 = vld [vmem:[#allocation2] sm:$0xf]  ;;  %vm53_vm7 = vcmask 1043456  }
   0xc   :  { %v46_v7 = vmul.f32 %v289_v5, %v289_v5  ;;  %s262_s22 = smov [#allocation7]   ;;  %s158_s26 = sshll.u32 %s315_s3, 4  ;;  %s159_s26 = int_to_ptr.hbm [resolvable:$true] %s158_s26 }
   0xd   :  { %v45_v1 = vand.u32 127, %v44_v0  ;;  %s156_s23 = sshll.u32 %s262_s22, 4  ;;  %s157_s23 = int_to_ptr.vmem [resolvable:$true] %s156_s23 }
   0xf   :  { %vm48_vm0 = vcmp.lt.s32.totalorder %v45_v1, 32  ;;  %vm86_vm1 = vcmp.ge.s32.totalorder %v45_v1, 64  ;;  %vm87_vm2 = vcmp.lt.s32.totalorder %v45_v1, 96  ;;  %vm67_vm3 = vcmp.ge.s32.totalorder %v45_v1, 32 }
  0x10   :  { %v169_v3 = vsel %vm48_vm0, 1.0, %v261_v2  ;;  %vm88_vm4 = vmand %vm86_vm1, %vm87_vm2  ;;  %vm68_vm5 = vcmp.lt.s32.totalorder %v45_v1, 64  ;;  %vm105_vm8 = vcmp.ge.s32.totalorder %v45_v1, 96 }
  0x11   :  { %v171_v4 = vsel %vm88_vm4, 1.0, %v261_v2  ;;  %vm69_vm6 = vmand %vm67_vm3, %vm68_vm5  ;;  %v52_v6 = vmul.f32 %v169_v3, %v289_v5  ;;  %v57_v11 = vmul.f32 %v169_v3, %v46_v7  ;;  %v172_v19 = vsel %vm105_vm8, 1.0, %v261_v2 }
  0x12   :  { %v91_v8 = vmul.f32 %v171_v4, %v289_v5  ;;  %v170_v9 = vsel %vm69_vm6, 1.0, %v261_v2  ;;  %v95_v15 = vmul.f32 %v171_v4, %v46_v7  ;;  %v110_v21 = vmul.f32 %v172_v19, %v289_v5  ;;  %v177_v2 = vld [vmem:[#allocation5] ss:$0 sm:$0xff] }
  0x13   :  { %v54_v10 = vsel %vm53_vm7, %v52_v6, 0.0  ;;  %v58_v13 = vsel %vm53_vm7, %v57_v11, 0.0  ;;  %v72_v14 = vmul.f32 %v170_v9, %v289_v5  ;;  %v76_v16 = vmul.f32 %v170_v9, %v46_v7  ;;  %v178_v6 = vld [vmem:[%s314_s2] ss:$0 sm:$0xff] }
  0x14   :  { %v92_v12 = vsel %vm53_vm7, %v91_v8, 0.0  ;;  %55 = vadd.xlane.f32.xlu0 %v54_v10  ;;  %59 = vadd.xlane.f32.xlu1 %v58_v13  ;;  %v96_v18 = vsel %vm53_vm7, %v95_v15, 0.0  ;;  %v114_v22 = vmul.f32 %v172_v19, %v46_v7  ;;  %v111_v23 = vsel %vm53_vm7, %v110_v21, 0.0 }
  0x15   :  { %93 = vadd.xlane.f32.xlu2 %v92_v12  ;;  %v73_v17 = vsel %vm53_vm7, %v72_v14, 0.0  ;;  %v77_v20 = vsel %vm53_vm7, %v76_v16, 0.0 }
  0x16   :  { %v115_v24 = vsel %vm53_vm7, %v114_v22, 0.0 }
  0x1c   :  { %74 = vadd.xlane.f32.xlu0 %v73_v17  ;;  %78 = vadd.xlane.f32.xlu1 %v77_v20 }
  0x1d   :  { %97 = vadd.xlane.f32.xlu2 %v96_v18 }
  0x24   :  { %112 = vadd.xlane.f32.xlu0 %v111_v23  ;;  %116 = vadd.xlane.f32.xlu1 %v115_v24 }
  0x87   :  { %v56_v25 = vpop.xlane.xlu0 %55  ;;  %v60_v27 = vpop.xlane.xlu1 %59 }
  0x88   :  { %v94_v26 = vpop.xlane.xlu2 %93  ;;  %v61_v29 = vmul.f32 0.03125, %v56_v25  ;;  %v64_v33 = vmul.f32 0.03125, %v60_v27 }
  0x89   :  { %v99_v37 = vmul.f32 0.03125, %v94_v26 }
  0x8a   :  { %v62_v36 = vmul.f32 %v169_v3, %v61_v29  ;;  %v65_v40 = vmul.f32 %v169_v3, %v64_v33 }
  0x8b   :  { %v100_v43 = vmul.f32 %v171_v4, %v99_v37 }
  0x8f   :  { %v75_v28 = vpop.xlane.xlu0 %74  ;;  %v79_v31 = vpop.xlane.xlu1 %78 }
  0x90   :  { %v80_v30 = vmul.f32 0.03125, %v75_v28  ;;  %v98_v32 = vpop.xlane.xlu2 %97  ;;  %v83_v35 = vmul.f32 0.03125, %v79_v31 }
  0x91   :  { %v102_v39 = vmul.f32 0.03125, %v98_v32 }
  0x92   :  { %v81_v34 = vmul.f32 %v170_v9, %v80_v30  ;;  %v84_v38 = vmul.f32 %v170_v9, %v83_v35 }
  0x93   :  { %v103_v45 = vmul.f32 %v171_v4, %v102_v39 }
  0x94   :  { %v82_v41 = vadd.f32 %v81_v34, %v62_v36  ;;  %v85_v44 = vadd.f32 %v84_v38, %v65_v40 }
  0x96   :  { %v101_v48 = vadd.f32 %v100_v43, %v82_v41  ;;  %v104_v51 = vadd.f32 %v103_v45, %v85_v44 }
  0x97   :  { %v113_v42 = vpop.xlane.xlu0 %112  ;;  %v117_v47 = vpop.xlane.xlu1 %116 }
  0x98   :  { %v118_v46 = vmul.f32 0.03125, %v113_v42  ;;  %v121_v50 = vmul.f32 0.03125, %v117_v47 }
  0x9a   :  { %v119_v49 = vmul.f32 %v172_v19, %v118_v46  ;;  %v122_v53 = vmul.f32 %v172_v19, %v121_v50 }
  0x9c   :  { %v120_v52 = vadd.f32 %v119_v49, %v101_v48  ;;  %v123_v55 = vadd.f32 %v122_v53, %v104_v51 }
  0x9e   :  { %v124_v54 = vmul.f32 %v120_v52, %v120_v52  ;;  %v127_v1 = vsub.f32 %v289_v5, %v120_v52 }
  0xa0   :  { %v125_v56 = vsub.f32 %v123_v55, %v124_v54 }
  0xa2   :  { %v126_v57 = vmax.f32 %v125_v56, 0.0 }
  0xa4   :  { %v128_v58 = vadd.f32 1e-12, %v126_v57 }
  0xa6   :  { %179 = vrsqrt.f32 %v128_v58  ;;  %vm135_vm10 = vweird.f32 %v128_v58 }
  0xac   :  { %v180_v59 = vpop.eup %179 }
  0xad   :  { %v130_v60 = vmul.f32 %v180_v59, %v128_v58  ;;  %vm136_vm9 = vweird.f32 %v180_v59 }
  0xae   :  { %vm137_vm11 = vmor %vm135_vm10, %vm136_vm9 }
  0xaf   :  { %v131_v61 = vmul.f32 %v180_v59, %v130_v60 }
  0xb1   :  { %v132_v62 = vmul.f32 0.5, %v131_v61 }
  0xb3   :  { %v133_v63 = vsub.f32 1.5, %v132_v62 }
  0xb5   :  { %v134_v0 = vmul.f32 %v180_v59, %v133_v63 }
  0xb7   :  { %v138_v3 = vsel %vm137_vm11, %v180_v59, %v134_v0 }
  0xb8   :  { %v139_v4 = vmul.f32 %v138_v3, %v127_v1 }
  0xba   :  { %v145_v7 = vmul.f32 %v177_v2, %v139_v4 }
  0xbc   :  { %v149_v8 = vadd.f32 %v178_v6, %v145_v7 }
  0xbe   :  { %150 = vst [vmem:[#allocation7] sm:$0xf] %v149_v8 }
  0xbf   :  { %161 = dma.vmem_to_hbm [thread:$0]  %s157_s23, 64, %s159_s26, [#allocation4]  }
  0xc0   :  { %257 = dma.done.wait [#allocation4], 64  }
  0xc1   :  { %258 = vsyncadd [#allocation4], 4294967232 }
  0xc2   :  { %166 = vsyncpa [#allocation3], 1 }
  0xc3   :  { %167 = vsyncpa [#allocation6], 1 }
  0xc4   :  { %168 = vsyncpa [#allocation4], 1 }

</bundles_post_ra>
